<compile_context>
chip_gen: v5e
topology: v5e:2x2
jax: 0.10.0
libtpu: 0.0.40
codegen_flags: <defaults>
</compile_context>

<pallas_src>
import math

import jax
import jax.numpy as jnp
from jax import lax
from jax.experimental import pallas as pl
from jax.experimental.pallas import tpu as pltpu

HIDDEN = 32
NUM_HEADS = 4
HEAD_DIM = HIDDEN // NUM_HEADS
HALF = HEAD_DIM // 2
BATCH = 2
SEQ = 8
BS = BATCH * SEQ                       # collapsed (batch*seq) rows


# ------------------------------------------------------------------ kernel

def _mha_fused_kernel(x_ref, wqkv_ref, wo_ref, rot_ref, cs_ref, mask_ref,
                      o_ref):
    """Whole batch in one step: fused qkv proj + RoPE + attention + o proj."""
    x = x_ref[...]                       # (BS, H)
    wqkv = wqkv_ref[...]                 # (H, 3H)   q-part pre-scaled by 1/sqrt(hd)
    wo = wo_ref[...]                     # (H, H)    already transposed (in, out)
    rot = rot_ref[...]                   # (3H, 3H)  block-diag rotate_half (zero v block)
    cos = cs_ref[:BS, :]                 # (BS, 3H)  cos tiled per head, =1 over v cols
    sin = cs_ref[BS:, :]                 # (BS, 3H)  sin tiled per head, =0 over v cols
    mask = mask_ref[...]                 # (BS, BS)  block-diag additive mask

    # Fused q/k/v projection: one (BS,H)@(H,3H) MXU push.
    qkv = jnp.dot(x, wqkv, preferred_element_type=jnp.float32)        # (BS, 3H)

    # RoPE on the whole slab (v columns pass through: cos=1, sin=0, rot=0).
    qkv = qkv * cos + jnp.dot(qkv, rot, preferred_element_type=jnp.float32) * sin

    # Per-head attention, statically unrolled (NUM_HEADS = 4).  The output
    # projection is accumulated inside the loop so per-head results never need
    # to be re-concatenated along the lane axis.
    y = jnp.zeros((BS, HIDDEN), dtype=jnp.float32)
    for h in range(NUM_HEADS):
        q_sl = slice(h * HEAD_DIM, (h + 1) * HEAD_DIM)
        k_sl = slice(HIDDEN + h * HEAD_DIM, HIDDEN + (h + 1) * HEAD_DIM)
        v_sl = slice(2 * HIDDEN + h * HEAD_DIM, 2 * HIDDEN + (h + 1) * HEAD_DIM)
        qh = qkv[:, q_sl]                # (BS, hd)
        kh = qkv[:, k_sl]
        vh = qkv[:, v_sl]

        # q @ k^T without materializing a transposed copy of k.
        s = lax.dot_general(qh, kh, (((1,), (1,)), ((), ())),
                            preferred_element_type=jnp.float32)       # (BS, BS)
        s = s + mask                     # causal + cross-batch -1e9; scale in wq
        m = jnp.max(s, axis=-1, keepdims=True)
        p = jnp.exp(s - m)               # cross-batch entries underflow to 0
        denom = jnp.sum(p, axis=-1, keepdims=True)
        inv = pl.reciprocal(denom, approx=True)        # EUP slot
        inv = inv * (2.0 - denom * inv)                # one NR step -> ~f32 exact
        attn = p * inv
        # TODO(synk): dropout omitted — kernel implements eval/inference semantics.

        oh = jnp.dot(attn, vh, preferred_element_type=jnp.float32)    # (BS, hd)
        # Accumulate this head's contribution to the output projection.
        y = y + jnp.dot(oh, wo[q_sl, :], preferred_element_type=jnp.float32)

    o_ref[...] = y                       # single (BS, H) store


# ------------------------------------------------------------------ wrapper

def multi_head_attention(x, wq, wk, wv, wo, freqs_cos, freqs_sin, attn_mask):
    """Forward pass equivalent to MultiHeadAttention.forward (eval mode).

    x: (B, S, H).  w*: PyTorch Linear weights of shape (H, H) (out, in).
    freqs_cos / freqs_sin: (S, head_dim).  attn_mask: (S, S) additive.
    """
    B, S, H = x.shape
    assert H == HIDDEN and S == SEQ and B == BATCH

    # -------- host-side weight/table prep (precomputed once per model) ------
    inv_scale = 1.0 / math.sqrt(HEAD_DIM)
    wqkv_t = jnp.concatenate([wq.T * inv_scale, wk.T, wv.T], axis=1)   # (H, 3H)
    wo_t = wo.T                                                        # (H, H)

    # Block-diagonal rotate_half matrix:  (q @ rot) == rotate_half per head.
    blk = jnp.zeros((HEAD_DIM, HEAD_DIM), dtype=jnp.float32)
    idx = jnp.arange(HALF)
    blk = blk.at[idx + HALF, idx].set(-1.0)
    blk = blk.at[idx, idx + HALF].set(1.0)
    rot_h = jnp.kron(jnp.eye(NUM_HEADS, dtype=jnp.float32), blk)       # (H, H)
    rot3 = jnp.zeros((3 * H, 3 * H), dtype=jnp.float32)
    rot3 = rot3.at[:H, :H].set(rot_h)
    rot3 = rot3.at[H:2 * H, H:2 * H].set(rot_h)                        # v block = 0

    # RoPE tables tiled across heads, padded over the v columns (cos=1, sin=0),
    # tiled across batch, and stacked [cos; sin] into one constant DMA.
    cos_h = jnp.tile(freqs_cos, (1, NUM_HEADS))                        # (S, H)
    sin_h = jnp.tile(freqs_sin, (1, NUM_HEADS))
    cos3 = jnp.concatenate([cos_h, cos_h, jnp.ones((S, H), jnp.float32)], axis=1)
    sin3 = jnp.concatenate([sin_h, sin_h, jnp.zeros((S, H), jnp.float32)], axis=1)
    cos_bs = jnp.tile(cos3, (B, 1))                                    # (BS, 3H)
    sin_bs = jnp.tile(sin3, (B, 1))
    cossin = jnp.concatenate([cos_bs, sin_bs], axis=0)                 # (2*BS, 3H)

    # Block-diagonal additive mask over the collapsed (B*S) axis: the given
    # (S,S) mask inside each batch block, -1e9 across batches (exp underflows
    # to exactly 0, so no cross-batch leakage).
    mask_bd = jnp.full((BS, BS), -1e9, dtype=jnp.float32)
    for b in range(B):
        mask_bd = mask_bd.at[b * S:(b + 1) * S, b * S:(b + 1) * S].set(attn_mask)

    x_flat = x.reshape(BS, H)

    full = lambda shp: pl.BlockSpec(shp, lambda i: (0, 0))
    out = pl.pallas_call(
        _mha_fused_kernel,
        out_shape=jax.ShapeDtypeStruct((BS, H), jnp.float32),
        grid=(1,),                                      # single collapsed step
        in_specs=[
            full((BS, H)),                              # x (batch collapsed)
            full((H, 3 * H)),                           # wqkv (q pre-scaled)
            full((H, H)),                               # wo^T
            full((3 * H, 3 * H)),                       # rotate_half matrix
            full((2 * BS, 3 * H)),                      # [cos; sin] table
            full((BS, BS)),                             # block-diag additive mask
        ],
        out_specs=full((BS, H)),
        compiler_params=pltpu.CompilerParams(
            dimension_semantics=("arbitrary",)),
    )(x_flat, wqkv_t, wo_t, rot3, cossin, mask_bd)
    return out.reshape(B, S, H)


# ------------------------------------------------------------------ reference

def _rotate_half(x):
    x1 = x[..., : x.shape[-1] // 2]
    x2 = x[..., x.shape[-1] // 2:]
    return jnp.concatenate([-x2, x1], axis=-1)


def reference(x, wq, wk, wv, wo, freqs_cos, freqs_sin, attn_mask):
    B, S, H = x.shape
    q = (x @ wq.T).reshape(B, S, NUM_HEADS, HEAD_DIM).transpose(0, 2, 1, 3)
    k = (x @ wk.T).reshape(B, S, NUM_HEADS, HEAD_DIM).transpose(0, 2, 1, 3)
    v = (x @ wv.T).reshape(B, S, NUM_HEADS, HEAD_DIM).transpose(0, 2, 1, 3)
    q = q * freqs_cos + _rotate_half(q) * freqs_sin
    k = k * freqs_cos + _rotate_half(k) * freqs_sin
    scores = jnp.einsum("bhqd,bhkd->bhqk", q, k) / math.sqrt(HEAD_DIM)
    scores = scores + attn_mask
    attn = jax.nn.softmax(scores, axis=-1)
    out = jnp.einsum("bhqk,bhkd->bhqd", attn, v)
    out = out.transpose(0, 2, 1, 3).reshape(B, S, H)
    return out @ wo.T


# ------------------------------------------------------------------ main

if __name__ == "__main__":
    key = jax.random.PRNGKey(0)
    kx, kq, kk, kv, ko = jax.random.split(key, 5)

    x = jax.random.normal(kx, (BATCH, SEQ, HIDDEN), dtype=jnp.float32)
    scale = 1.0 / math.sqrt(HIDDEN)
    wq = jax.random.normal(kq, (HIDDEN, HIDDEN), dtype=jnp.float32) * scale
    wk = jax.random.normal(kk, (HIDDEN, HIDDEN), dtype=jnp.float32) * scale
    wv = jax.random.normal(kv, (HIDDEN, HIDDEN), dtype=jnp.float32) * scale
    wo = jax.random.normal(ko, (HIDDEN, HIDDEN), dtype=jnp.float32) * scale

    # Rotary embedding tables (S, head_dim).
    inv_freq = 1.0 / (10000.0 ** (jnp.arange(0, HEAD_DIM, 2, dtype=jnp.float32)
                                  / HEAD_DIM))
    pos = jnp.arange(SEQ, dtype=jnp.float32)
    freqs = jnp.outer(pos, inv_freq)                       # (S, head_dim/2)
    emb = jnp.concatenate([freqs, freqs], axis=-1)         # (S, head_dim)
    freqs_cos = jnp.cos(emb)
    freqs_sin = jnp.sin(emb)

    # Additive causal attention mask (S, S): 0 where allowed, -1e9 otherwise.
    causal = jnp.tril(jnp.ones((SEQ, SEQ), dtype=jnp.float32))
    attn_mask = (1.0 - causal) * -1e9

    out = multi_head_attention(x, wq, wk, wv, wo, freqs_cos, freqs_sin, attn_mask)
    out = jax.block_until_ready(out)

    ref = reference(x, wq, wk, wv, wo, freqs_cos, freqs_sin, attn_mask)
    max_err = float(jnp.max(jnp.abs(out - ref)))
    assert out.shape == (BATCH, SEQ, HIDDEN), out.shape
    assert jnp.allclose(out, ref, atol=2e-3, rtol=2e-3), \
        f"mismatch vs reference (max_abs_err={max_err})"

    print("KERNEL_OK")
</pallas_src>

<mosaic_0001>
module attributes {stable_mosaic.version = 11 : i64} {
  func.func @_mha_fused_kernel(%arg0: i32, %arg1: memref<16x32xf32, #tpu.memory_space<vmem>>, %arg2: memref<32x96xf32, #tpu.memory_space<vmem>>, %arg3: memref<32x32xf32, #tpu.memory_space<vmem>>, %arg4: memref<96x96xf32, #tpu.memory_space<vmem>>, %arg5: memref<32x96xf32, #tpu.memory_space<vmem>>, %arg6: memref<16x16xf32, #tpu.memory_space<vmem>>, %arg7: memref<16x32xf32, #tpu.memory_space<vmem>>) attributes {dimension_semantics = [#tpu.dimension_semantics<arbitrary>], iteration_bounds = array<i64: 1>, scalar_prefetch = 0 : i64, scratch_operands = 0 : i64, tpu.core_type = #tpu.core_type<tc>, window_params = [{pipeline_mode = #tpu.pipeline_mode<synchronous>, transform_indices = @transform_0, window_bounds = array<i64: 16, 32>}, {pipeline_mode = #tpu.pipeline_mode<synchronous>, transform_indices = @transform_1, window_bounds = array<i64: 32, 96>}, {pipeline_mode = #tpu.pipeline_mode<synchronous>, transform_indices = @transform_2, window_bounds = array<i64: 32, 32>}, {pipeline_mode = #tpu.pipeline_mode<synchronous>, transform_indices = @transform_3, window_bounds = array<i64: 96, 96>}, {pipeline_mode = #tpu.pipeline_mode<synchronous>, transform_indices = @transform_4, window_bounds = array<i64: 32, 96>}, {pipeline_mode = #tpu.pipeline_mode<synchronous>, transform_indices = @transform_5, window_bounds = array<i64: 16, 16>}, {pipeline_mode = #tpu.pipeline_mode<synchronous>, transform_indices = @transform_6, window_bounds = array<i64: 16, 32>}]} {
    %c0 = arith.constant 0 : index
    %c0_0 = arith.constant 0 : index
    %0 = vector.load %arg1[%c0, %c0_0] : memref<16x32xf32, #tpu.memory_space<vmem>>, vector<16x32xf32>
    %c0_1 = arith.constant 0 : index
    %c0_2 = arith.constant 0 : index
    %1 = vector.load %arg2[%c0_1, %c0_2] : memref<32x96xf32, #tpu.memory_space<vmem>>, vector<32x96xf32>
    %c0_3 = arith.constant 0 : index
    %c0_4 = arith.constant 0 : index
    %2 = vector.load %arg3[%c0_3, %c0_4] : memref<32x32xf32, #tpu.memory_space<vmem>>, vector<32x32xf32>
    %c0_5 = arith.constant 0 : index
    %c0_6 = arith.constant 0 : index
    %3 = vector.load %arg4[%c0_5, %c0_6] : memref<96x96xf32, #tpu.memory_space<vmem>>, vector<96x96xf32>
    %c0_7 = arith.constant 0 : index
    %c0_8 = arith.constant 0 : index
    %4 = vector.load %arg5[%c0_7, %c0_8] : memref<32x96xf32, #tpu.memory_space<vmem>>, vector<16x96xf32>
    %c16 = arith.constant 16 : index
    %c0_9 = arith.constant 0 : index
    %5 = vector.load %arg5[%c16, %c0_9] : memref<32x96xf32, #tpu.memory_space<vmem>>, vector<16x96xf32>
    %c0_10 = arith.constant 0 : index
    %c0_11 = arith.constant 0 : index
    %6 = vector.load %arg6[%c0_10, %c0_11] : memref<16x16xf32, #tpu.memory_space<vmem>>, vector<16x16xf32>
    %cst = arith.constant dense<0.000000e+00> : vector<16x96xf32>
    %7 = tpu.matmul %0, %1, %cst {dimension_numbers = #tpu.dot_dimension_numbers<[1], [0], [0], [1], [0, 0, 1, 1], [], []>} : vector<16x32xf32>, vector<32x96xf32>, vector<16x96xf32> -> vector<16x96xf32>
    %8 = arith.mulf %7, %4 : vector<16x96xf32>
    %cst_12 = arith.constant dense<0.000000e+00> : vector<16x96xf32>
    %9 = tpu.matmul %7, %3, %cst_12 {dimension_numbers = #tpu.dot_dimension_numbers<[1], [0], [0], [1], [0, 0, 1, 1], [], []>} : vector<16x96xf32>, vector<96x96xf32>, vector<16x96xf32> -> vector<16x96xf32>
    %10 = arith.mulf %9, %5 : vector<16x96xf32>
    %11 = arith.addf %8, %10 : vector<16x96xf32>
    %cst_13 = arith.constant 0.000000e+00 : f32
    %12 = vector.broadcast %cst_13 : f32 to vector<16x32xf32>
    %13 = vector.extract_strided_slice %11 {offsets = [0, 0], sizes = [16, 8], strides = [1, 1]} : vector<16x96xf32> to vector<16x8xf32>
    %14 = vector.extract_strided_slice %11 {offsets = [0, 32], sizes = [16, 8], strides = [1, 1]} : vector<16x96xf32> to vector<16x8xf32>
    %15 = vector.extract_strided_slice %11 {offsets = [0, 64], sizes = [16, 8], strides = [1, 1]} : vector<16x96xf32> to vector<16x8xf32>
    %cst_14 = arith.constant dense<0.000000e+00> : vector<16x16xf32>
    %16 = tpu.matmul %13, %14, %cst_14 {dimension_numbers = #tpu.dot_dimension_numbers<[1], [1], [0], [0], [0, 0, 1, 0], [], []>} : vector<16x8xf32>, vector<16x8xf32>, vector<16x16xf32> -> vector<16x16xf32>
    %17 = arith.addf %16, %6 : vector<16x16xf32>
    %cst_15 = arith.constant dense<0xFF800000> : vector<16xf32>
    %18 = vector.multi_reduction <maximumf>, %17, %cst_15 [1] : vector<16x16xf32> to vector<16xf32>
    %19 = vector.shape_cast %18 : vector<16xf32> to vector<16x1xf32>
    %20 = vector.broadcast %19 : vector<16x1xf32> to vector<16x16xf32>
    %21 = arith.subf %17, %20 : vector<16x16xf32>
    %22 = math.exp %21 : vector<16x16xf32>
    %cst_16 = arith.constant dense<0.000000e+00> : vector<16xf32>
    %23 = vector.multi_reduction <add>, %22, %cst_16 [1] : vector<16x16xf32> to vector<16xf32>
    %24 = vector.shape_cast %23 : vector<16xf32> to vector<16x1xf32>
    %25 = tpu.reciprocal %24 {approx = true} : vector<16x1xf32> -> vector<16x1xf32>
    %26 = arith.mulf %24, %25 : vector<16x1xf32>
    %cst_17 = arith.constant 2.000000e+00 : f32
    %27 = vector.broadcast %cst_17 : f32 to vector<16x1xf32>
    %28 = arith.subf %27, %26 : vector<16x1xf32>
    %29 = arith.mulf %25, %28 : vector<16x1xf32>
    %30 = vector.broadcast %29 : vector<16x1xf32> to vector<16x16xf32>
    %31 = arith.mulf %22, %30 : vector<16x16xf32>
    %cst_18 = arith.constant dense<0.000000e+00> : vector<16x8xf32>
    %32 = tpu.matmul %31, %15, %cst_18 {dimension_numbers = #tpu.dot_dimension_numbers<[1], [0], [0], [1], [0, 0, 1, 1], [], []>} : vector<16x16xf32>, vector<16x8xf32>, vector<16x8xf32> -> vector<16x8xf32>
    %33 = vector.extract_strided_slice %2 {offsets = [0, 0], sizes = [8, 32], strides = [1, 1]} : vector<32x32xf32> to vector<8x32xf32>
    %cst_19 = arith.constant dense<0.000000e+00> : vector<16x32xf32>
    %34 = tpu.matmul %32, %33, %cst_19 {dimension_numbers = #tpu.dot_dimension_numbers<[1], [0], [0], [1], [0, 0, 1, 1], [], []>} : vector<16x8xf32>, vector<8x32xf32>, vector<16x32xf32> -> vector<16x32xf32>
    %35 = arith.addf %12, %34 : vector<16x32xf32>
    %36 = vector.extract_strided_slice %11 {offsets = [0, 8], sizes = [16, 8], strides = [1, 1]} : vector<16x96xf32> to vector<16x8xf32>
    %37 = vector.extract_strided_slice %11 {offsets = [0, 40], sizes = [16, 8], strides = [1, 1]} : vector<16x96xf32> to vector<16x8xf32>
    %38 = vector.extract_strided_slice %11 {offsets = [0, 72], sizes = [16, 8], strides = [1, 1]} : vector<16x96xf32> to vector<16x8xf32>
    %cst_20 = arith.constant dense<0.000000e+00> : vector<16x16xf32>
    %39 = tpu.matmul %36, %37, %cst_20 {dimension_numbers = #tpu.dot_dimension_numbers<[1], [1], [0], [0], [0, 0, 1, 0], [], []>} : vector<16x8xf32>, vector<16x8xf32>, vector<16x16xf32> -> vector<16x16xf32>
    %40 = arith.addf %39, %6 : vector<16x16xf32>
    %cst_21 = arith.constant dense<0xFF800000> : vector<16xf32>
    %41 = vector.multi_reduction <maximumf>, %40, %cst_21 [1] : vector<16x16xf32> to vector<16xf32>
    %42 = vector.shape_cast %41 : vector<16xf32> to vector<16x1xf32>
    %43 = vector.broadcast %42 : vector<16x1xf32> to vector<16x16xf32>
    %44 = arith.subf %40, %43 : vector<16x16xf32>
    %45 = math.exp %44 : vector<16x16xf32>
    %cst_22 = arith.constant dense<0.000000e+00> : vector<16xf32>
    %46 = vector.multi_reduction <add>, %45, %cst_22 [1] : vector<16x16xf32> to vector<16xf32>
    %47 = vector.shape_cast %46 : vector<16xf32> to vector<16x1xf32>
    %48 = tpu.reciprocal %47 {approx = true} : vector<16x1xf32> -> vector<16x1xf32>
    %49 = arith.mulf %47, %48 : vector<16x1xf32>
    %cst_23 = arith.constant 2.000000e+00 : f32
    %50 = vector.broadcast %cst_23 : f32 to vector<16x1xf32>
    %51 = arith.subf %50, %49 : vector<16x1xf32>
    %52 = arith.mulf %48, %51 : vector<16x1xf32>
    %53 = vector.broadcast %52 : vector<16x1xf32> to vector<16x16xf32>
    %54 = arith.mulf %45, %53 : vector<16x16xf32>
    %cst_24 = arith.constant dense<0.000000e+00> : vector<16x8xf32>
    %55 = tpu.matmul %54, %38, %cst_24 {dimension_numbers = #tpu.dot_dimension_numbers<[1], [0], [0], [1], [0, 0, 1, 1], [], []>} : vector<16x16xf32>, vector<16x8xf32>, vector<16x8xf32> -> vector<16x8xf32>
    %56 = vector.extract_strided_slice %2 {offsets = [8, 0], sizes = [8, 32], strides = [1, 1]} : vector<32x32xf32> to vector<8x32xf32>
    %cst_25 = arith.constant dense<0.000000e+00> : vector<16x32xf32>
    %57 = tpu.matmul %55, %56, %cst_25 {dimension_numbers = #tpu.dot_dimension_numbers<[1], [0], [0], [1], [0, 0, 1, 1], [], []>} : vector<16x8xf32>, vector<8x32xf32>, vector<16x32xf32> -> vector<16x32xf32>
    %58 = arith.addf %35, %57 : vector<16x32xf32>
    %59 = vector.extract_strided_slice %11 {offsets = [0, 16], sizes = [16, 8], strides = [1, 1]} : vector<16x96xf32> to vector<16x8xf32>
    %60 = vector.extract_strided_slice %11 {offsets = [0, 48], sizes = [16, 8], strides = [1, 1]} : vector<16x96xf32> to vector<16x8xf32>
    %61 = vector.extract_strided_slice %11 {offsets = [0, 80], sizes = [16, 8], strides = [1, 1]} : vector<16x96xf32> to vector<16x8xf32>
    %cst_26 = arith.constant dense<0.000000e+00> : vector<16x16xf32>
    %62 = tpu.matmul %59, %60, %cst_26 {dimension_numbers = #tpu.dot_dimension_numbers<[1], [1], [0], [0], [0, 0, 1, 0], [], []>} : vector<16x8xf32>, vector<16x8xf32>, vector<16x16xf32> -> vector<16x16xf32>
    %63 = arith.addf %62, %6 : vector<16x16xf32>
    %cst_27 = arith.constant dense<0xFF800000> : vector<16xf32>
    %64 = vector.multi_reduction <maximumf>, %63, %cst_27 [1] : vector<16x16xf32> to vector<16xf32>
    %65 = vector.shape_cast %64 : vector<16xf32> to vector<16x1xf32>
    %66 = vector.broadcast %65 : vector<16x1xf32> to vector<16x16xf32>
    %67 = arith.subf %63, %66 : vector<16x16xf32>
    %68 = math.exp %67 : vector<16x16xf32>
    %cst_28 = arith.constant dense<0.000000e+00> : vector<16xf32>
    %69 = vector.multi_reduction <add>, %68, %cst_28 [1] : vector<16x16xf32> to vector<16xf32>
    %70 = vector.shape_cast %69 : vector<16xf32> to vector<16x1xf32>
    %71 = tpu.reciprocal %70 {approx = true} : vector<16x1xf32> -> vector<16x1xf32>
    %72 = arith.mulf %70, %71 : vector<16x1xf32>
    %cst_29 = arith.constant 2.000000e+00 : f32
    %73 = vector.broadcast %cst_29 : f32 to vector<16x1xf32>
    %74 = arith.subf %73, %72 : vector<16x1xf32>
    %75 = arith.mulf %71, %74 : vector<16x1xf32>
    %76 = vector.broadcast %75 : vector<16x1xf32> to vector<16x16xf32>
    %77 = arith.mulf %68, %76 : vector<16x16xf32>
    %cst_30 = arith.constant dense<0.000000e+00> : vector<16x8xf32>
    %78 = tpu.matmul %77, %61, %cst_30 {dimension_numbers = #tpu.dot_dimension_numbers<[1], [0], [0], [1], [0, 0, 1, 1], [], []>} : vector<16x16xf32>, vector<16x8xf32>, vector<16x8xf32> -> vector<16x8xf32>
    %79 = vector.extract_strided_slice %2 {offsets = [16, 0], sizes = [8, 32], strides = [1, 1]} : vector<32x32xf32> to vector<8x32xf32>
    %cst_31 = arith.constant dense<0.000000e+00> : vector<16x32xf32>
    %80 = tpu.matmul %78, %79, %cst_31 {dimension_numbers = #tpu.dot_dimension_numbers<[1], [0], [0], [1], [0, 0, 1, 1], [], []>} : vector<16x8xf32>, vector<8x32xf32>, vector<16x32xf32> -> vector<16x32xf32>
    %81 = arith.addf %58, %80 : vector<16x32xf32>
    %82 = vector.extract_strided_slice %11 {offsets = [0, 24], sizes = [16, 8], strides = [1, 1]} : vector<16x96xf32> to vector<16x8xf32>
    %83 = vector.extract_strided_slice %11 {offsets = [0, 56], sizes = [16, 8], strides = [1, 1]} : vector<16x96xf32> to vector<16x8xf32>
    %84 = vector.extract_strided_slice %11 {offsets = [0, 88], sizes = [16, 8], strides = [1, 1]} : vector<16x96xf32> to vector<16x8xf32>
    %cst_32 = arith.constant dense<0.000000e+00> : vector<16x16xf32>
    %85 = tpu.matmul %82, %83, %cst_32 {dimension_numbers = #tpu.dot_dimension_numbers<[1], [1], [0], [0], [0, 0, 1, 0], [], []>} : vector<16x8xf32>, vector<16x8xf32>, vector<16x16xf32> -> vector<16x16xf32>
    %86 = arith.addf %85, %6 : vector<16x16xf32>
    %cst_33 = arith.constant dense<0xFF800000> : vector<16xf32>
    %87 = vector.multi_reduction <maximumf>, %86, %cst_33 [1] : vector<16x16xf32> to vector<16xf32>
    %88 = vector.shape_cast %87 : vector<16xf32> to vector<16x1xf32>
    %89 = vector.broadcast %88 : vector<16x1xf32> to vector<16x16xf32>
    %90 = arith.subf %86, %89 : vector<16x16xf32>
    %91 = math.exp %90 : vector<16x16xf32>
    %cst_34 = arith.constant dense<0.000000e+00> : vector<16xf32>
    %92 = vector.multi_reduction <add>, %91, %cst_34 [1] : vector<16x16xf32> to vector<16xf32>
    %93 = vector.shape_cast %92 : vector<16xf32> to vector<16x1xf32>
    %94 = tpu.reciprocal %93 {approx = true} : vector<16x1xf32> -> vector<16x1xf32>
    %95 = arith.mulf %93, %94 : vector<16x1xf32>
    %cst_35 = arith.constant 2.000000e+00 : f32
    %96 = vector.broadcast %cst_35 : f32 to vector<16x1xf32>
    %97 = arith.subf %96, %95 : vector<16x1xf32>
    %98 = arith.mulf %94, %97 : vector<16x1xf32>
    %99 = vector.broadcast %98 : vector<16x1xf32> to vector<16x16xf32>
    %100 = arith.mulf %91, %99 : vector<16x16xf32>
    %cst_36 = arith.constant dense<0.000000e+00> : vector<16x8xf32>
    %101 = tpu.matmul %100, %84, %cst_36 {dimension_numbers = #tpu.dot_dimension_numbers<[1], [0], [0], [1], [0, 0, 1, 1], [], []>} : vector<16x16xf32>, vector<16x8xf32>, vector<16x8xf32> -> vector<16x8xf32>
    %102 = vector.extract_strided_slice %2 {offsets = [24, 0], sizes = [8, 32], strides = [1, 1]} : vector<32x32xf32> to vector<8x32xf32>
    %cst_37 = arith.constant dense<0.000000e+00> : vector<16x32xf32>
    %103 = tpu.matmul %101, %102, %cst_37 {dimension_numbers = #tpu.dot_dimension_numbers<[1], [0], [0], [1], [0, 0, 1, 1], [], []>} : vector<16x8xf32>, vector<8x32xf32>, vector<16x32xf32> -> vector<16x32xf32>
    %104 = arith.addf %81, %103 : vector<16x32xf32>
    %c0_38 = arith.constant 0 : index
    %c0_39 = arith.constant 0 : index
    %105 = vector.load %arg7[%c0_38, %c0_39] : memref<16x32xf32, #tpu.memory_space<vmem>>, vector<16x32xf32>
    tpu.vector_store %arg7[%c0_38, %c0_39], %104 {strides = array<i32>} : memref<16x32xf32, #tpu.memory_space<vmem>>, vector<16x32xf32>,
    return
  }
  func.func @transform_0(%arg0: i32) -> (i32, i32) {
    %c0_i32 = arith.constant 0 : i32
    %c0_i32_0 = arith.constant 0 : i32
    %c0_i32_1 = arith.constant 0 : i32
    return %c0_i32, %c0_i32_0 : i32, i32
  }
  func.func @transform_1(%arg0: i32) -> (i32, i32) {
    %c0_i32 = arith.constant 0 : i32
    %c0_i32_0 = arith.constant 0 : i32
    %c0_i32_1 = arith.constant 0 : i32
    return %c0_i32, %c0_i32_0 : i32, i32
  }
  func.func @transform_2(%arg0: i32) -> (i32, i32) {
    %c0_i32 = arith.constant 0 : i32
    %c0_i32_0 = arith.constant 0 : i32
    %c0_i32_1 = arith.constant 0 : i32
    return %c0_i32, %c0_i32_0 : i32, i32
  }
  func.func @transform_3(%arg0: i32) -> (i32, i32) {
    %c0_i32 = arith.constant 0 : i32
    %c0_i32_0 = arith.constant 0 : i32
    %c0_i32_1 = arith.constant 0 : i32
    return %c0_i32, %c0_i32_0 : i32, i32
  }
  func.func @transform_4(%arg0: i32) -> (i32, i32) {
    %c0_i32 = arith.constant 0 : i32
    %c0_i32_0 = arith.constant 0 : i32
    %c0_i32_1 = arith.constant 0 : i32
    return %c0_i32, %c0_i32_0 : i32, i32
  }
  func.func @transform_5(%arg0: i32) -> (i32, i32) {
    %c0_i32 = arith.constant 0 : i32
    %c0_i32_0 = arith.constant 0 : i32
    %c0_i32_1 = arith.constant 0 : i32
    return %c0_i32, %c0_i32_0 : i32, i32
  }
  func.func @transform_6(%arg0: i32) -> (i32, i32) {
    %c0_i32 = arith.constant 0 : i32
    %c0_i32_0 = arith.constant 0 : i32
    %c0_i32_1 = arith.constant 0 : i32
    return %c0_i32, %c0_i32_0 : i32, i32
  }
}

</mosaic_0001>

<bundles_post_ra>
// kernel: tpu_custom_call.1
= control target key start
LH: loop header
LB: loop body
LE: loop exit
PB: predicated region body
PF: predicated region fallthrough
CT: control target
= control target key end

     0   :  { %11 = vsyncpa [#allocation3], 0  ;;  %s1257_s0 = inlined_call_operand.hbm [shape: f32[16,32], index: 0, kind: input, shape index: {}]   ;;  %s1258_s1 = inlined_call_operand.hbm [shape: f32[32,96], index: 1, kind: input, shape index: {}]   ;;  %s1259_s2 = inlined_call_operand.hbm [shape: f32[32,32], index: 2, kind: input, shape index: {}]   ;;  %s1260_s3 = inlined_call_operand.hbm [shape: f32[96,96], index: 3, kind: input, shape index: {}]   ;;  %s1261_s4 = inlined_call_operand.hbm [shape: f32[32,96], index: 4, kind: input, shape index: {}]   ;;  %s1262_s5 = inlined_call_operand.hbm [shape: f32[16,16], index: 5, kind: input, shape index: {}]   ;;  %s1263_s6 = inlined_call_operand.hbm [shape: f32[16,32], index: 6, kind: output, shape index: {}]  }
   0x1   :  { %12 = vsyncpa [#allocation6], 0 }
   0x2   :  { %13 = vsyncpa [#allocation9], 0 }
   0x3   :  { %14 = vsyncpa [#allocation12], 0 }
   0x4   :  { %15 = vsyncpa [#allocation4], 0  ;;  %s33_s23 = sshll.u32 %s1258_s1, 4  ;;  %s1054_s24 = smov [#allocation5]   ;;  %s34_s23 = int_to_ptr.hbm [resolvable:$true] %s33_s23 }
   0x5   :  { %s35_s25 = sshll.u32 %s1054_s24, 4  ;;  %s59_s28 = sshll.u32 %s1260_s3, 4  ;;  %s36_s25 = int_to_ptr.vmem [resolvable:$true] %s35_s25  ;;  %s60_s28 = int_to_ptr.hbm [resolvable:$true] %s59_s28 }
   0x6   :  { %s1055_s29 = smov 128   ;;  %s1056_s30 = smov 8  }
   0x7   :  { %41 = dma.hbm_to_vmem [thread:$0]  %s34_s23, 512, %s36_s25, [#allocation6], %s1055_s29, %s1055_s29, %s1056_s30  }
   0x8   :  { %s1057_s7 = smov [#allocation8]   ;;  %s20_s1 = sshll.u32 %s1257_s0, 4  ;;  %s21_s1 = int_to_ptr.hbm [resolvable:$true] %s20_s1 }
   0x9   :  { %s61_s8 = sshll.u32 %s1057_s7, 4  ;;  %s46_s12 = sshll.u32 %s1259_s2, 4  ;;  %s62_s8 = int_to_ptr.vmem [resolvable:$true] %s61_s8  ;;  %s47_s12 = int_to_ptr.hbm [resolvable:$true] %s46_s12 }
   0xa   :  { %67 = dma.hbm_to_vmem [thread:$0]  %s60_s28, 1536, %s62_s8, [#allocation9], %s1055_s29, %s1055_s29, %s1056_s30  }
   0xb   :  { %s1058_s13 = smov [#allocation2]   ;;  %s1059_s15 = smov [#allocation7]  }
   0xc   :  { %s22_s14 = sshll.u32 %s1058_s13, 4  ;;  %s48_s0 = sshll.u32 %s1059_s15, 4  ;;  %s23_s14 = int_to_ptr.vmem [resolvable:$true] %s22_s14  ;;  %s49_s0 = int_to_ptr.vmem [resolvable:$true] %s48_s0 }
   0xd   :  { %28 = dma.hbm_to_vmem [thread:$0]  %s21_s1, 256, %s23_s14, [#allocation3], %s1055_s29, %s1055_s29, %s1056_s30  }
   0xe   :  { %s72_s18 = sshll.u32 %s1261_s4, 4  ;;  %s85_s20 = sshll.u32 %s1262_s5, 4  ;;  %s73_s18 = int_to_ptr.hbm [resolvable:$true] %s72_s18  ;;  %s86_s20 = int_to_ptr.hbm [resolvable:$true] %s85_s20 }
   0xf   :  { %54 = dma.hbm_to_vmem [thread:$0]  %s47_s12, 512, %s49_s0, [#allocation6], %s1055_s29, %s1055_s29, %s1056_s30  }
  0x10   :  { %s1060_s21 = smov [#allocation10]   ;;  %s1061_s23 = smov [#allocation11]  }
  0x11   :  { %s74_s22 = sshll.u32 %s1060_s21, 4  ;;  %s87_s4 = sshll.u32 %s1061_s23, 4  ;;  %s75_s22 = int_to_ptr.vmem [resolvable:$true] %s74_s22  ;;  %s88_s4 = int_to_ptr.vmem [resolvable:$true] %s87_s4 }
  0x12   :  { %80 = dma.hbm_to_vmem [thread:$0]  %s73_s18, 512, %s75_s22, [#allocation9], %s1055_s29, %s1055_s29, %s1056_s30  }
  0x13   :  { %93 = dma.hbm_to_vmem [thread:$0]  %s86_s20, 256, %s88_s4, [#allocation12], %s1055_s29, %s1055_s29, %s1056_s30  }
  0x14   :  { %1044 = dma.done.wait [#allocation3], 256  }
  0x15   :  { %1045 = vsyncadd [#allocation3], 4294967040 }
  0x16   :  { %1046 = dma.done.wait [#allocation6], 1024  }
  0x17   :  { %1047 = vsyncadd [#allocation6], 4294966272 }
  0x18   :  { %1048 = dma.done.wait [#allocation9], 2048  }
  0x19   :  { %1049 = vsyncadd [#allocation9], 4294965248 }
  0x1a   :  { %1050 = dma.done.wait [#allocation12], 256  }
  0x1b   :  { %1051 = vsyncadd [#allocation12], 4294967040  ;;  %v123_v0 = vld [vmem:[#allocation5 + $0x18] sm:$0xff]  ;;  %v122_v1 = vld [vmem:[#allocation5 + $0x10] sm:$0xff]  ;;  %vm146_vm0 = vcmask 261120   ;;  %vm178_vm1 = vcmask 785408  }
  0x1c   :  { %165 = vmatpush.msra.mxu0 %v123_v0  ;;  %800 = vmatpush.msra.mxu2 %v123_v0  ;;  %v121_v2 = vld [vmem:[#allocation5 + $0x8] sm:$0xff]  ;;  %v139_v3 = vld [vmem:[#allocation8 + $0x58] sm:$0xff]  ;;  %v138_v4 = vld [vmem:[#allocation8 + $0x50] sm:$0xff]  ;;  %s1062_s5 = smov 96   ;;  %s1063_s24 = smov 64   ;;  %vm218_vm2 = vcmask 64512  }
  0x1d   :  { %v120_v5 = vld [vmem:[#allocation5] sm:$0xff]  ;;  %189 = vmatpush.msra.mxu1 %v139_v3  ;;  %v118_v6 = vld [vmem:[#allocation2] sm:$0xff]  ;;  %v119_v7 = vld [vmem:[#allocation2 + $0x8] sm:$0xff]  ;;  %s1064_s25 = smov 120   ;;  %vm250_vm3 = vcmask 130048   ;;  %s1065_s26 = smov 88  }
  0x1e   :  { %166 = vmatpush.msra.mxu0 %v122_v1  ;;  %801 = vmatpush.msra.mxu2 %v122_v1  ;;  %v137_v8 = vld [vmem:[#allocation8 + $0x48] sm:$0xff]  ;;  %v136_v9 = vld [vmem:[#allocation8 + $0x40] sm:$0xff]  ;;  %v135_v10 = vld [vmem:[#allocation8 + $0x38] sm:$0xff]  ;;  %s1066_s27 = smov 80   ;;  %s1067_s28 = smov 72  }
  0x1f   :  { %190 = vmatpush.msra.mxu1 %v138_v4  ;;  %v134_v11 = vld [vmem:[#allocation8 + $0x30] sm:$0xff]  ;;  %v133_v12 = vld [vmem:[#allocation8 + $0x28] sm:$0xff]  ;;  %v132_v13 = vld [vmem:[#allocation8 + $0x20] sm:$0xff]  ;;  %s1068_s7 = smov 56   ;;  %s1069_s8 = smov 112  }
  0x20   :  { %167 = vmatpush.msra.mxu0 %v121_v2  ;;  %802 = vmatpush.msra.mxu2 %v121_v2  ;;  %v131_v14 = vld [vmem:[#allocation8 + $0x18] sm:$0xff]  ;;  %v130_v15 = vld [vmem:[#allocation8 + $0x10] sm:$0xff]  ;;  %v129_v16 = vld [vmem:[#allocation8 + $0x8] sm:$0xff]  ;;  %s1070_s9 = smov 104   ;;  %s1071_s10 = smov 40  }
  0x21   :  { %191 = vmatpush.msra.mxu1 %v137_v8  ;;  %v128_v17 = vld [vmem:[#allocation8] sm:$0xff]  ;;  %v141_v21 = vld [vmem:[#allocation10 + $0x8] sm:$0xff]  ;;  %v143_v22 = vld [vmem:[#allocation10 + $0x18] sm:$0xff]  ;;  %s1072_s1 = smov 48   ;;  %s1073_s3 = smov [#allocation13]  }
  0x22   :  { %168 = vmatpush.msra.mxu0 %v120_v5  ;;  %803 = vmatpush.msra.mxu2 %v120_v5  ;;  %v142_v27 = vld [vmem:[#allocation10 + $0x10] sm:$0xff]  ;;  %v140_v28 = vld [vmem:[#allocation10] sm:$0xff]  ;;  %v1170_v42 = vld [vmem:[#allocation11 + $0x8] sm:$0xff]  ;;  %s746_s11 = sshll.u32 %s1073_s3, 4  ;;  %s748_s14 = sshll.u32 %s1263_s6, 4  ;;  %s747_s11 = int_to_ptr.vmem [resolvable:$true] %s746_s11  ;;  %s749_s14 = int_to_ptr.hbm [resolvable:$true] %s748_s14 }
  0x23   :  { %764 = vmatmul.msk.f32.vlgmr.msra.gmra.mxu0 %vm146_vm0, %v118_v6  ;;  %765 = vmatmul.msk.f32.vlgmr.msra.gmra.mxu2 %vm146_vm0, %v119_v7  ;;  %v1166_v38 = vld [vmem:[#allocation11] sm:$0xff] }
  0x24   :  { %192 = vmatpush.msra.mxu1 %v136_v9  ;;  %v124_v8 = vld [vmem:[#allocation7] sm:$0xff] }
  0x26   :  { %193 = vmatpush.msra.mxu1 %v135_v10 }
  0x28   :  { %194 = vmatpush.msra.mxu1 %v134_v11 }
  0x2a   :  { %195 = vmatpush.msra.mxu1 %v133_v12 }
  0x2c   :  { %196 = vmatpush.msra.mxu1 %v132_v13 }
  0x2e   :  { %197 = vmatpush.msra.mxu1 %v131_v14 }
  0x30   :  { %198 = vmatpush.msra.mxu1 %v130_v15 }
  0x32   :  { %199 = vmatpush.msra.mxu1 %v129_v16 }
  0x34   :  { %200 = vmatpush.msra.mxu1 %v128_v17 }
  0xa0   :  { %v170_v18 = vpop.f32.mrf.mxu0 }
  0xa1   :  { %766 = vmatmul.msk.f32.vlgmr.msra.gmra.mxu1 %vm178_vm1, %v170_v18  ;;  %v176_v30 = vmul.f32 %v170_v18, %v140_v28 }
  0xa6   :  { %v173_v19 = vpop.f32.mrf.mxu2 }
  0xa7   :  { %v177_v24 = vmul.f32 %v173_v19, %v141_v21 }
  0xa9   :  { %767 = vmatmul.msk.f32.gmra.mxu1 %vm178_vm1, %v173_v19 }
 0x11e   :  { %v202_v20 = vpop.f32.mrf.mxu1 }
 0x11f   :  { %v208_v29 = vmul.f32 %v202_v20, %v142_v27 }
 0x121   :  { %v1150_v31 = vadd.f32 %v208_v29, %v176_v30 }
 0x126   :  { %v205_v23 = vpop.f32.mrf.mxu1 }
 0x127   :  { %v209_v25 = vmul.f32 %v205_v23, %v143_v22 }
 0x129   :  { %v1147_v26 = vadd.f32 %v209_v25, %v177_v24 }
 0x12b   :  { %216 = vrot.lane.b32.xlu0 %v1147_v26, %s1062_s5  ;;  %v1155_v32 = vpack.i.bf16 %v1150_v31, %v1147_v26 }
 0x133   :  { %214 = vrot.lane.b32.xlu0 %v1150_v31, %s1062_s5 }
 0x13b   :  { %825 = vrot.lane.b32.xlu0 %v1155_v32, %s1063_s24 }
 0x143   :  { %314 = vrot.lane.b32.xlu0 %v1150_v31, %s1064_s25 }
 0x14b   :  { %316 = vrot.lane.b32.xlu0 %v1147_v26, %s1064_s25 }
 0x19d   :  { %v217_v33 = vpop.permute.xlu0 %216 }
 0x19e   :  { %768 = vmatpush.xpose.msk.msrb.mxu2 %vm218_vm2, %v217_v33 }
 0x1a5   :  { %v215_v34 = vpop.permute.xlu0 %214 }
 0x1a6   :  { %769 = vmatpush.xpose.msk.msrb.mxu2 %vm218_vm2, %v215_v34 }
 0x1a9   :  { %770 = vmatmul.msk.f32.vlgmr.msrb.gmra.mxu2 %vm218_vm2, %v1150_v31 }
 0x1ad   :  { %v826_v35 = vpop.permute.xlu0 %825 }
 0x1ae   :  { %v827_v36 = vunpack.i.l.bf16 %v826_v35  ;;  %v828_v37 = vunpack.i.h.bf16 %v826_v35 }
 0x1b0   :  { %305 = vmatpush.msra.mxu3 %v827_v36 }
 0x1b1   :  { %771 = vmatmul.msk.f32.gmra.mxu2 %vm218_vm2, %v1147_v26 }
 0x1b2   :  { %306 = vmatpush.msra.mxu3 %v828_v37 }
 0x1b5   :  { %v315_v6 = vpop.permute.xlu0 %314 }
 0x1bd   :  { %v317_v7 = vpop.permute.xlu0 %316 }
 0x22c   :  { %v244_v39 = vpop.f32.mrf.mxu2 }
 0x22d   :  { %v245_v40 = vadd.f32 %v244_v39, %v1166_v38 }
 0x22f   :  { %v251_v41 = vsel %vm250_vm3, %v245_v40, -inf }
 0x230   :  { %252 = vmax.xlane.f32.xlu1 %v251_v41 }
 0x234   :  { %v247_v43 = vpop.f32.mrf.mxu2 }
 0x235   :  { %v248_v44 = vadd.f32 %v247_v43, %v1170_v42 }
 0x237   :  { %v254_v45 = vsel %vm250_vm3, %v248_v44, -inf }
 0x238   :  { %255 = vmax.xlane.f32.xlu1 %v254_v45 }
 0x251   :  { %320 = vrot.lane.b32.xlu1 %v1147_v26, %s1065_s26 }
 0x259   :  { %480 = vrot.lane.b32.xlu1 %v1147_v26, %s1066_s27 }
 0x261   :  { %611 = vrot.lane.b32.xlu1 %v1150_v31, %s1067_s28 }
 0x2a3   :  { %v253_v46 = vpop.xlane.xlu1 %252 }
 0x2a4   :  { %v257_v47 = vsub.f32 %v245_v40, %v253_v46 }
 0x2a6   :  { %v259_v48 = vmul.f32 1.442695, %v257_v47 }
 0x2a8   :  { %844 = vpow2.f32 %v259_v48 }
 0x2ab   :  { %v256_v49 = vpop.xlane.xlu1 %255 }
 0x2ac   :  { %v258_v50 = vsub.f32 %v248_v44, %v256_v49 }
 0x2ae   :  { %v845_v51 = vpop.eup %844  ;;  %v261_v52 = vmul.f32 1.442695, %v258_v50 }
 0x2af   :  { %v263_v53 = vsel %vm250_vm3, %v845_v51, 0.0 }
 0x2b0   :  { %846 = vpow2.f32 %v261_v52  ;;  %264 = vadd.xlane.f32.xlu2 %v263_v53  ;;  %v125_v53 = vld [vmem:[#allocation7 + $0x8] sm:$0xff] }
 0x2b1   :  { %437 = vmatpush.msra.mxu2 %v125_v53 }
 0x2b6   :  { %v847_v54 = vpop.eup %846 }
 0x2b7   :  { %v266_v55 = vsel %vm250_vm3, %v847_v54, 0.0 }
 0x2b8   :  { %267 = vadd.xlane.f32.xlu2 %v266_v55 }
 0x2c3   :  { %v321_v56 = vpop.permute.xlu1 %320 }
 0x2c4   :  { %774 = vmatpush.xpose.msk.msrb.mxu3 %vm218_vm2, %v321_v56 }
 0x2cb   :  { %v481_v22 = vpop.permute.xlu1 %480 }
 0x2d0   :  { %318 = vrot.lane.b32.xlu2 %v1150_v31, %s1065_s26 }
 0x2d3   :  { %v612_v30 = vpop.permute.xlu1 %611 }
 0x323   :  { %v265_v57 = vpop.xlane.xlu2 %264 }
 0x324   :  { %848 = vrcp.f32 %v265_v57 }
 0x32a   :  { %v849_v58 = vpop.eup %848 }
 0x32b   :  { %v271_v59 = vmul.f32 %v849_v58, %v265_v57  ;;  %v268_v60 = vpop.xlane.xlu2 %267 }
 0x32c   :  { %850 = vrcp.f32 %v268_v60 }
 0x32d   :  { %v273_v61 = vsub.f32 2.0, %v271_v59 }
 0x32f   :  { %v275_v62 = vmul.f32 %v849_v58, %v273_v61 }
 0x331   :  { %v277_v63 = vmul.f32 %v845_v51, %v275_v62 }
 0x332   :  { %v851_v0 = vpop.eup %850 }
 0x333   :  { %v272_v1 = vmul.f32 %v851_v0, %v268_v60  ;;  %v319_v2 = vpop.permute.xlu2 %318  ;;  %772 = vmatmul.msk.f32.vlgmr.msra.gmra.mxu3 %vm250_vm3, %v277_v63 }
 0x334   :  { %775 = vmatpush.xpose.msk.msrb.mxu3 %vm218_vm2, %v319_v2 }
 0x335   :  { %v274_v3 = vsub.f32 2.0, %v272_v1 }
 0x337   :  { %v276_v4 = vmul.f32 %v851_v0, %v274_v3 }
 0x338   :  { %466 = vmatpush.msra.mxu3 %v124_v8 }
 0x339   :  { %v278_v5 = vmul.f32 %v847_v54, %v276_v4 }
 0x33b   :  { %773 = vmatmul.msk.f32.gmra.mxu3 %vm250_vm3, %v278_v5 }
 0x343   :  { %776 = vmatmul.msk.f32.vlgmr.msrb.gmra.mxu3 %vm218_vm2, %v315_v6 }
 0x34b   :  { %777 = vmatmul.msk.f32.gmra.mxu3 %vm218_vm2, %v317_v7 }
 0x3b6   :  { %v308_v9 = vpop.f32.mrf.mxu3 }
 0x3b7   :  { %782 = vmatmul.msk.f32.vlgmr.msra.gmra.mxu3 %vm218_vm2, %v308_v9 }
 0x3be   :  { %v311_v10 = vpop.f32.mrf.mxu3 }
 0x3bf   :  { %783 = vmatmul.msk.f32.gmra.mxu3 %vm218_vm2, %v311_v10 }
 0x3c6   :  { %v347_v11 = vpop.f32.mrf.mxu3 }
 0x3c7   :  { %v348_v12 = vadd.f32 %v347_v11, %v1166_v38 }
 0x3c9   :  { %v353_v13 = vsel %vm250_vm3, %v348_v12, -inf }
 0x3ca   :  { %354 = vmax.xlane.f32.xlu0 %v353_v13 }
 0x3ce   :  { %v350_v14 = vpop.f32.mrf.mxu3 }
 0x3cf   :  { %v351_v15 = vadd.f32 %v350_v14, %v1170_v42 }
 0x3d1   :  { %v356_v16 = vsel %vm250_vm3, %v351_v15, -inf }
 0x3d2   :  { %357 = vmax.xlane.f32.xlu2 %v356_v16 }
 0x3de   :  { %830 = vrot.lane.b32.xlu0 %v1155_v32, %s1068_s7 }
 0x3e6   :  { %478 = vrot.lane.b32.xlu0 %v1150_v31, %s1066_s27 }
 0x3ea   :  { %613 = vrot.lane.b32.xlu2 %v1147_v26, %s1067_s28 }
 0x3ee   :  { %474 = vrot.lane.b32.xlu0 %v1150_v31, %s1069_s8 }
 0x3f6   :  { %609 = vrot.lane.b32.xlu0 %v1147_v26, %s1070_s9 }
 0x43a   :  { %v1219_v54 = vpop.f32.mrf.mxu3 }
 0x43d   :  { %v355_v17 = vpop.xlane.xlu0 %354 }
 0x43e   :  { %v359_v18 = vsub.f32 %v348_v12, %v355_v17 }
 0x440   :  { %v361_v19 = vmul.f32 1.442695, %v359_v18 }
 0x442   :  { %852 = vpow2.f32 %v361_v19  ;;  %v1221_v55 = vpop.f32.mrf.mxu3 }
 0x445   :  { %v358_v20 = vpop.xlane.xlu2 %357 }
 0x446   :  { %v360_v21 = vsub.f32 %v351_v15, %v358_v20 }
 0x448   :  { %v853_v23 = vpop.eup %852  ;;  %v363_v24 = vmul.f32 1.442695, %v360_v21 }
 0x449   :  { %v365_v25 = vsel %vm250_vm3, %v853_v23, 0.0 }
 0x44a   :  { %854 = vpow2.f32 %v363_v24  ;;  %366 = vadd.xlane.f32.xlu1 %v365_v25 }
 0x44d   :  { %v614_v27 = vpop.permute.xlu2 %613 }
 0x44e   :  { %792 = vmatpush.xpose.msk.msrb.mxu3 %vm218_vm2, %v614_v27 }
 0x450   :  { %v855_v28 = vpop.eup %854  ;;  %v831_v29 = vpop.permute.xlu0 %830 }
 0x451   :  { %v368_v33 = vsel %vm250_vm3, %v855_v28, 0.0  ;;  %v832_v34 = vunpack.i.l.bf16 %v831_v29  ;;  %v833_v35 = vunpack.i.h.bf16 %v831_v29 }
 0x452   :  { %369 = vadd.xlane.f32.xlu2 %v368_v33  ;;  %793 = vmatpush.xpose.msk.msrb.mxu3 %vm218_vm2, %v612_v30 }
 0x453   :  { %407 = vmatpush.msrb.mxu0 %v832_v34 }
 0x455   :  { %408 = vmatpush.msrb.mxu0 %v833_v35 }
 0x457   :  { %784 = vmatpush.xpose.msk.msra.mxu0 %vm218_vm2, %v481_v22 }
 0x458   :  { %v479_v36 = vpop.permute.xlu0 %478 }
 0x45b   :  { %785 = vmatpush.xpose.msk.msra.mxu0 %vm218_vm2, %v479_v36 }
 0x460   :  { %v475_v45 = vpop.permute.xlu0 %474 }
 0x463   :  { %476 = vrot.lane.b32.xlu1 %v1147_v26, %s1069_s8 }
 0x468   :  { %v610_v51 = vpop.permute.xlu0 %609 }
 0x46a   :  { %607 = vrot.lane.b32.xlu2 %v1150_v31, %s1070_s9 }
 0x4bd   :  { %v367_v37 = vpop.xlane.xlu1 %366 }
 0x4be   :  { %856 = vrcp.f32 %v367_v37 }
 0x4c4   :  { %v857_v39 = vpop.eup %856 }
 0x4c5   :  { %v373_v40 = vmul.f32 %v857_v39, %v367_v37  ;;  %v370_v41 = vpop.xlane.xlu2 %369 }
 0x4c6   :  { %858 = vrcp.f32 %v370_v41 }
 0x4c7   :  { %v375_v43 = vsub.f32 2.0, %v373_v40 }
 0x4c9   :  { %v377_v44 = vmul.f32 %v857_v39, %v375_v43 }
 0x4cb   :  { %v379_v46 = vmul.f32 %v853_v23, %v377_v44 }
 0x4cc   :  { %v859_v47 = vpop.eup %858 }
 0x4cd   :  { %v374_v48 = vmul.f32 %v859_v47, %v370_v41  ;;  %v608_v49 = vpop.permute.xlu2 %607  ;;  %778 = vmatmul.msk.f32.vlgmr.msrb.gmra.mxu0 %vm250_vm3, %v379_v46 }
 0x4ce   :  { %794 = vmatmul.msk.f32.vlgmr.msrb.gmra.mxu3 %vm218_vm2, %v608_v49 }
 0x4cf   :  { %v376_v26 = vsub.f32 2.0, %v374_v48 }
 0x4d1   :  { %v378_v50 = vmul.f32 %v859_v47, %v376_v26 }
 0x4d3   :  { %v380_v31 = vmul.f32 %v855_v28, %v378_v50 }
 0x4d5   :  { %779 = vmatmul.msk.f32.gmra.mxu0 %vm250_vm3, %v380_v31  ;;  %v477_v52 = vpop.permute.xlu1 %476 }
 0x4d6   :  { %795 = vmatmul.msk.f32.gmra.mxu3 %vm218_vm2, %v610_v51 }
 0x4dd   :  { %786 = vmatmul.msk.f32.vlgmr.msra.gmra.mxu0 %vm218_vm2, %v475_v45 }
 0x4e5   :  { %787 = vmatmul.msk.f32.gmra.mxu0 %vm218_vm2, %v477_v52 }
 0x54a   :  { %v410_v56 = vpop.f32.mrf.mxu0 }
 0x54b   :  { %780 = vmatmul.msk.f32.vlgmr.msra.gmra.mxu2 %vm218_vm2, %v410_v56 }
 0x551   :  { %v640_v57 = vpop.f32.mrf.mxu3 }
 0x552   :  { %v641_v58 = vadd.f32 %v640_v57, %v1166_v38  ;;  %v413_v59 = vpop.f32.mrf.mxu0 }
 0x553   :  { %781 = vmatmul.msk.f32.gmra.mxu2 %vm218_vm2, %v413_v59  ;;  %v126_v59 = vld [vmem:[#allocation7 + $0x10] sm:$0xff] }
 0x554   :  { %v646_v60 = vsel %vm250_vm3, %v641_v58, -inf  ;;  %597 = vmatpush.msrb.mxu2 %v126_v59 }
 0x555   :  { %647 = vmax.xlane.f32.xlu0 %v646_v60 }
 0x559   :  { %v643_v0 = vpop.f32.mrf.mxu3 }
 0x55a   :  { %v507_v61 = vpop.f32.mrf.mxu0  ;;  %v644_v1 = vadd.f32 %v643_v0, %v1170_v42 }
 0x55b   :  { %v508_v62 = vadd.f32 %v507_v61, %v1166_v38 }
 0x55c   :  { %v649_v5 = vsel %vm250_vm3, %v644_v1, -inf }
 0x55d   :  { %v513_v63 = vsel %vm250_vm3, %v508_v62, -inf }
 0x55e   :  { %514 = vmax.xlane.f32.xlu2 %v513_v63 }
 0x562   :  { %v510_v2 = vpop.f32.mrf.mxu0 }
 0x563   :  { %v511_v3 = vadd.f32 %v510_v2, %v1170_v42 }
 0x565   :  { %v516_v4 = vsel %vm250_vm3, %v511_v3, -inf }
 0x566   :  { %517 = vmax.xlane.f32.xlu1 %v516_v4  ;;  %650 = vmax.xlane.f32.xlu2 %v649_v5 }
 0x5c8   :  { %v648_v6 = vpop.xlane.xlu0 %647 }
 0x5c9   :  { %v652_v7 = vsub.f32 %v641_v58, %v648_v6  ;;  %v127_v58 = vld [vmem:[#allocation7 + $0x18] sm:$0xff] }
 0x5cb   :  { %v654_v8 = vmul.f32 1.442695, %v652_v7 }
 0x5cd   :  { %860 = vpow2.f32 %v654_v8 }
 0x5ce   :  { %v439_v0 = vpop.f32.mrf.mxu2 }
 0x5cf   :  { %v469_v2 = vadd.f32 %v1219_v54, %v439_v0 }
 0x5d1   :  { %v515_v38 = vpop.xlane.xlu2 %514 }
 0x5d2   :  { %v519_v9 = vsub.f32 %v508_v62, %v515_v38 }
 0x5d3   :  { %v861_v10 = vpop.eup %860 }
 0x5d4   :  { %v521_v11 = vmul.f32 1.442695, %v519_v9  ;;  %v658_v12 = vsel %vm250_vm3, %v861_v10, 0.0 }
 0x5d5   :  { %659 = vadd.xlane.f32.xlu2 %v658_v12 }
 0x5d6   :  { %862 = vpow2.f32 %v521_v11 }
 0x5d9   :  { %v518_v13 = vpop.xlane.xlu1 %517  ;;  %v651_v42 = vpop.xlane.xlu2 %650 }
 0x5da   :  { %v520_v14 = vsub.f32 %v511_v3, %v518_v13  ;;  %v653_v17 = vsub.f32 %v644_v1, %v651_v42  ;;  %v442_v1 = vpop.f32.mrf.mxu2 }
 0x5db   :  { %v472_v7 = vadd.f32 %v1221_v55, %v442_v1 }
 0x5dc   :  { %v863_v15 = vpop.eup %862  ;;  %v523_v16 = vmul.f32 1.442695, %v520_v14  ;;  %v656_v19 = vmul.f32 1.442695, %v653_v17 }
 0x5dd   :  { %v525_v18 = vsel %vm250_vm3, %v863_v15, 0.0 }
 0x5de   :  { %864 = vpow2.f32 %v523_v16  ;;  %526 = vadd.xlane.f32.xlu1 %v525_v18 }
 0x5df   :  { %866 = vpow2.f32 %v656_v19 }
 0x5e4   :  { %v865_v20 = vpop.eup %864 }
 0x5e5   :  { %v528_v21 = vsel %vm250_vm3, %v865_v20, 0.0  ;;  %v867_v22 = vpop.eup %866 }
 0x5e6   :  { %529 = vadd.xlane.f32.xlu0 %v528_v21  ;;  %v661_v23 = vsel %vm250_vm3, %v867_v22, 0.0 }
 0x5ed   :  { %840 = vrot.lane.b32.xlu2 %v1155_v32, %s1071_s10 }
 0x5ee   :  { %662 = vadd.xlane.f32.xlu0 %v661_v23 }
 0x5f7   :  { %835 = vrot.lane.b32.xlu1 %v1155_v32, %s1072_s1 }
 0x648   :  { %v660_v24 = vpop.xlane.xlu2 %659 }
 0x649   :  { %868 = vrcp.f32 %v660_v24 }
 0x64f   :  { %v869_v25 = vpop.eup %868 }
 0x650   :  { %v666_v27 = vmul.f32 %v869_v25, %v660_v24  ;;  %v841_v28 = vpop.permute.xlu2 %840 }
 0x651   :  { %v842_v29 = vunpack.i.l.bf16 %v841_v28  ;;  %v843_v33 = vunpack.i.h.bf16 %v841_v28  ;;  %v527_v35 = vpop.xlane.xlu1 %526 }
 0x652   :  { %v668_v30 = vsub.f32 2.0, %v666_v27  ;;  %870 = vrcp.f32 %v527_v35 }
 0x653   :  { %700 = vmatpush.msrb.mxu0 %v842_v29 }
 0x654   :  { %v670_v34 = vmul.f32 %v869_v25, %v668_v30 }
 0x655   :  { %701 = vmatpush.msrb.mxu0 %v843_v33 }
 0x656   :  { %v672_v36 = vmul.f32 %v861_v10, %v670_v34 }
 0x658   :  { %796 = vmatmul.msk.f32.vlgmr.msrb.gmra.mxu0 %vm250_vm3, %v672_v36  ;;  %v871_v39 = vpop.eup %870 }
 0x659   :  { %v530_v37 = vpop.xlane.xlu0 %529  ;;  %v533_v32 = vmul.f32 %v871_v39, %v527_v35 }
 0x65a   :  { %872 = vrcp.f32 %v530_v37 }
 0x65b   :  { %v535_v41 = vsub.f32 2.0, %v533_v32 }
 0x65d   :  { %v537_v45 = vmul.f32 %v871_v39, %v535_v41 }
 0x65f   :  { %v539_v31 = vmul.f32 %v863_v15, %v537_v45 }
 0x660   :  { %v873_v43 = vpop.eup %872 }
 0x661   :  { %v663_v40 = vpop.xlane.xlu0 %662  ;;  %v534_v46 = vmul.f32 %v873_v43, %v530_v37 }
 0x662   :  { %874 = vrcp.f32 %v663_v40 }
 0x663   :  { %v536_v51 = vsub.f32 2.0, %v534_v46 }
 0x665   :  { %v538_v56 = vmul.f32 %v873_v43, %v536_v51 }
 0x667   :  { %v540_v57 = vmul.f32 %v865_v20, %v538_v56 }
 0x668   :  { %v875_v44 = vpop.eup %874 }
 0x669   :  { %v667_v47 = vmul.f32 %v875_v44, %v663_v40  ;;  %v836_v48 = vpop.permute.xlu1 %835 }
 0x66a   :  { %v837_v49 = vunpack.i.l.bf16 %v836_v48  ;;  %v838_v50 = vunpack.i.h.bf16 %v836_v48 }
 0x66b   :  { %v669_v26 = vsub.f32 2.0, %v667_v47 }
 0x66c   :  { %567 = vmatpush.msrb.mxu1 %v837_v49 }
 0x66d   :  { %v671_v52 = vmul.f32 %v875_v44, %v669_v26 }
 0x66e   :  { %568 = vmatpush.msrb.mxu1 %v838_v50 }
 0x66f   :  { %788 = vmatmul.msk.f32.vlgmr.msrb.gmra.mxu1 %vm250_vm3, %v539_v31  ;;  %v673_v53 = vmul.f32 %v867_v22, %v671_v52 }
 0x670   :  { %730 = vmatpush.msra.mxu1 %v127_v58 }
 0x671   :  { %797 = vmatmul.msk.f32.gmra.mxu0 %vm250_vm3, %v673_v53 }
 0x677   :  { %789 = vmatmul.msk.f32.gmra.mxu1 %vm250_vm3, %v540_v57 }
 0x6d5   :  { %v703_v60 = vpop.f32.mrf.mxu0 }
 0x6d6   :  { %798 = vmatmul.msk.f32.vlgmr.msra.gmra.mxu1 %vm218_vm2, %v703_v60 }
 0x6ec   :  { %v570_v61 = vpop.f32.mrf.mxu1 }
 0x6ed   :  { %790 = vmatmul.msk.f32.vlgmr.msrb.gmra.mxu2 %vm218_vm2, %v570_v61 }
 0x6ee   :  { %v706_v62 = vpop.f32.mrf.mxu0 }
 0x6ef   :  { %799 = vmatmul.msk.f32.gmra.mxu1 %vm218_vm2, %v706_v62 }
 0x6f4   :  { %v573_v63 = vpop.f32.mrf.mxu1 }
 0x6f5   :  { %791 = vmatmul.msk.f32.gmra.mxu2 %vm218_vm2, %v573_v63 }
 0x753   :  { %v732_v5 = vpop.f32.mrf.mxu1 }
 0x76c   :  { %v735_v9 = vpop.f32.mrf.mxu1 }
 0x770   :  { %v599_v3 = vpop.f32.mrf.mxu2 }
 0x771   :  { %v605_v4 = vadd.f32 %v599_v3, %v469_v2 }
 0x773   :  { %v738_v6 = vadd.f32 %v732_v5, %v605_v4 }
 0x775   :  { %740 = vst.msk [vmem:[#allocation13] sm:$0xff] %vm146_vm0, %v738_v6 }
 0x778   :  { %v602_v8 = vpop.f32.mrf.mxu2 }
 0x779   :  { %v606_v38 = vadd.f32 %v602_v8, %v472_v7 }
 0x77b   :  { %v739_v10 = vadd.f32 %v735_v9, %v606_v38 }
 0x77d   :  { %741 = vst.msk [vmem:[#allocation13 + $0x8] sm:$0xff] %vm146_vm0, %v739_v10 }
 0x77e   :  { %754 = dma.vmem_to_hbm [thread:$0]  %s747_s11, 256, %s749_s14, [#allocation4], %s1055_s29, %s1055_s29, %s1056_s30  }
 0x77f   :  { %1052 = dma.done.wait [#allocation4], 256  }
 0x780   :  { %1053 = vsyncadd [#allocation4], 4294967040 }
 0x781   :  { %759 = vsyncpa [#allocation3], 1 }
 0x782   :  { %760 = vsyncpa [#allocation6], 1 }
 0x783   :  { %761 = vsyncpa [#allocation9], 1 }
 0x784   :  { %762 = vsyncpa [#allocation12], 1 }
 0x785   :  { %763 = vsyncpa [#allocation4], 1 }

</bundles_post_ra>
